<compile_context>
chip_gen: v6e
topology: v6e:2x2x1
jax: 0.10.0
libtpu: 0.0.40
codegen_flags: <defaults>
</compile_context>

<pallas_src>
import math

import jax
import jax.numpy as jnp
from jax.experimental import pallas as pl
from jax.experimental.pallas import tpu as pltpu


def _round_up(x, m):
    return ((x + m - 1) // m) * m


# ---------------------------------------------------------------------------
# Stage 1:  Hs = diag(dinv) @ (X @ W_pad)          (lane-dense, nout padded)
# ---------------------------------------------------------------------------
def _linear_scale_kernel(x_ref, w_ref, dinv_ref, h_ref):
    h = jnp.dot(x_ref[...], w_ref[...], preferred_element_type=jnp.float32)
    # fold the column-side degree normalization into this stage (one VPU mul)
    h_ref[...] = (h * dinv_ref[...]).astype(h_ref.dtype)


# ---------------------------------------------------------------------------
# Stage 2:  out = diag(dinv) @ (A_hat @ Hs) + bias
#   grid = (row tiles [parallel], neighbor tiles [arbitrary/reduction])
# ---------------------------------------------------------------------------
def _aggregate_kernel(adj_ref, h_ref, dinv_ref, bias_ref, out_ref, acc_ref):
    @pl.when(pl.program_id(1) == 0)
    def _():
        acc_ref[...] = jnp.zeros_like(acc_ref)

    acc_ref[...] += jnp.dot(adj_ref[...], h_ref[...],
                            preferred_element_type=jnp.float32)

    @pl.when(pl.program_id(1) == pl.num_programs(1) - 1)
    def _():
        # row-side degree scale + bias fused into one multiply-add epilogue
        out_ref[...] = (acc_ref[...] * dinv_ref[...]
                        + bias_ref[...]).astype(out_ref.dtype)


def gcn_conv_pallas(x, weight, bias, edge_index):
    """PyG GCNConv forward: D^-1/2 (A+I) D^-1/2 (X @ W) + b."""
    n, nin = x.shape
    nout = weight.shape[1]

    # --- glue: dense adjacency with self loops + degree normalization -------
    row, col = edge_index                      # row = source, col = target
    a_hat = jnp.zeros((n, n), jnp.float32).at[col, row].set(1.0)
    diag = jnp.arange(n)
    a_hat = a_hat.at[diag, diag].set(1.0)      # add self loops
    deg = a_hat.sum(axis=1)                    # in-degree incl. self loop
    dinv = jnp.where(deg > 0, jax.lax.rsqrt(deg), 0.0)

    # --- padding: lane-dense feature dim, (8,128)-aligned node dim ----------
    n_p = max(128, _round_up(n, 128))
    nout_p = max(128, _round_up(nout, 128))

    x_p = jnp.zeros((n_p, nin), jnp.float32).at[:n, :].set(x)
    w_p = jnp.zeros((nin, nout_p), jnp.float32).at[:, :nout].set(weight)
    b_p = jnp.zeros((1, nout_p), jnp.float32).at[0, :nout].set(bias)
    a_p = jnp.zeros((n_p, n_p), jnp.float32).at[:n, :n].set(a_hat)
    dinv_p = jnp.zeros((n_p, 1), jnp.float32).at[:n, 0].set(dinv)

    # tile choice: 256/512-aligned when possible (v6e MXU), but sized so the
    # double-buffered working set stays far below the v7x 64 MiB VMEM.
    tm = 256 if n_p % 256 == 0 else 128
    tk = 512 if n_p % 512 == 0 else (256 if n_p % 256 == 0 else 128)

    # ---- stage 1: Hs = dinv * (X @ W) --------------------------------------
    h_scaled = pl.pallas_call(
        _linear_scale_kernel,
        out_shape=jax.ShapeDtypeStruct((n_p, nout_p), jnp.float32),
        grid_spec=pltpu.PrefetchScalarGridSpec(
            num_scalar_prefetch=0,
            grid=(n_p // tm,),
            in_specs=[pl.BlockSpec((tm, nin), lambda i: (i, 0)),
                      pl.BlockSpec((nin, nout_p), lambda i: (0, 0)),
                      pl.BlockSpec((tm, 1), lambda i: (i, 0))],
            out_specs=pl.BlockSpec((tm, nout_p), lambda i: (i, 0))),
        compiler_params=pltpu.CompilerParams(
            dimension_semantics=("parallel",)),
    )(x_p, w_p, dinv_p)

    # ---- stage 2: out = dinv * (A_hat @ Hs) + b ----------------------------
    flops = 2 * n_p * n_p * nout_p + 2 * n_p * nout_p
    bytes_accessed = 4 * (n_p * n_p + 2 * n_p * nout_p + n_p + nout_p)
    # double-buffered tiles + accumulator scratch, plus headroom
    vmem_need = 4 * (2 * tm * tk + 2 * tk * nout_p + 2 * tm * nout_p
                     + tm * nout_p + 4 * tm + 2 * nout_p)
    vmem_limit = int(min(48 * 1024 * 1024, max(8 * 1024 * 1024, 2 * vmem_need)))

    out_p = pl.pallas_call(
        _aggregate_kernel,
        out_shape=jax.ShapeDtypeStruct((n_p, nout_p), jnp.float32),
        grid_spec=pltpu.PrefetchScalarGridSpec(
            num_scalar_prefetch=0,
            grid=(n_p // tm, n_p // tk),
            in_specs=[pl.BlockSpec((tm, tk), lambda i, k: (i, k)),
                      pl.BlockSpec((tk, nout_p), lambda i, k: (k, 0)),
                      pl.BlockSpec((tm, 1), lambda i, k: (i, 0)),
                      pl.BlockSpec((1, nout_p), lambda i, k: (0, 0))],
            out_specs=pl.BlockSpec((tm, nout_p), lambda i, k: (i, 0)),
            scratch_shapes=[pltpu.VMEM((tm, nout_p), jnp.float32)]),
        compiler_params=pltpu.CompilerParams(
            dimension_semantics=("parallel", "arbitrary"),
            vmem_limit_bytes=vmem_limit),
        cost_estimate=pl.CostEstimate(flops=flops, transcendentals=0,
                                      bytes_accessed=bytes_accessed),
    )(a_p, h_scaled, dinv_p, b_p)

    return out_p[:n, :nout]


def gcn_pyg_forward(x, weight, bias, edge_index):
    """Mirror of GCN_pyg.forward: returns (h, None)."""
    h = gcn_conv_pallas(x, weight, bias, edge_index)
    return h, None


def reference_forward(x, weight, bias, edge_index):
    """Pure-JAX mirror of PyG GCNConv for the correctness check."""
    n = x.shape[0]
    row, col = edge_index
    a_hat = jnp.zeros((n, n), jnp.float32).at[col, row].set(1.0)
    diag = jnp.arange(n)
    a_hat = a_hat.at[diag, diag].set(1.0)
    deg = a_hat.sum(axis=1)
    dinv = jnp.where(deg > 0, 1.0 / jnp.sqrt(deg), 0.0)
    s = dinv[:, None] * a_hat * dinv[None, :]
    return s @ (x @ weight) + bias[None, :]


def xavier_uniform(key, shape):
    fan_in, fan_out = shape
    bound = math.sqrt(6.0 / (fan_in + fan_out))
    return jax.random.uniform(key, shape, jnp.float32, -bound, bound)


if __name__ == "__main__":
    N, NFEAT, NHID = 16, 32, 32

    key = jax.random.PRNGKey(0)
    kx, kw = jax.random.split(key, 2)

    x = jax.random.normal(kx, (N, NFEAT), jnp.float32)
    weight = xavier_uniform(kw, (NFEAT, NHID))      # GCNConv.lin: glorot init
    bias = jnp.zeros((NHID,), jnp.float32)          # GCNConv.bias: zeros init

    # deterministic undirected ring graph (no pre-existing self loops;
    # GCNConv adds them itself)
    idx = jnp.arange(N)
    row = jnp.concatenate([idx, (idx + 1) % N])     # sources
    col = jnp.concatenate([(idx + 1) % N, idx])     # targets
    edge_index = (row, col)

    h_out, aux = gcn_pyg_forward(x, weight, bias, edge_index)
    h_out = jax.block_until_ready(h_out)

    ref = reference_forward(x, weight, bias, edge_index)
    assert h_out.shape == (N, NHID)
    assert aux is None
    assert jnp.allclose(h_out, ref, atol=2e-3, rtol=2e-3), float(
        jnp.max(jnp.abs(h_out - ref)))

    print("KERNEL_OK")
</pallas_src>

<mosaic_0001>
module attributes {stable_mosaic.version = 11 : i64} {
  func.func @_linear_scale_kernel(%arg0: i32, %arg1: memref<128x32xf32, #tpu.memory_space<vmem>>, %arg2: memref<32x128xf32, #tpu.memory_space<vmem>>, %arg3: memref<128x1xf32, #tpu.memory_space<vmem>>, %arg4: memref<128x128xf32, #tpu.memory_space<vmem>>) attributes {dimension_semantics = [#tpu.dimension_semantics<parallel>], iteration_bounds = array<i64: 1>, scalar_prefetch = 0 : i64, scratch_operands = 0 : i64, tpu.core_type = #tpu.core_type<tc>, window_params = [{transform_indices = @transform_0, window_bounds = array<i64: 128, 32>}, {pipeline_mode = #tpu.pipeline_mode<synchronous>, transform_indices = @transform_1, window_bounds = array<i64: 32, 128>}, {transform_indices = @transform_2, window_bounds = array<i64: 128, 1>}, {transform_indices = @transform_3, window_bounds = array<i64: 128, 128>}]} {
    %c0 = arith.constant 0 : index
    %c0_0 = arith.constant 0 : index
    %0 = vector.load %arg1[%c0, %c0_0] : memref<128x32xf32, #tpu.memory_space<vmem>>, vector<128x32xf32>
    %c0_1 = arith.constant 0 : index
    %c0_2 = arith.constant 0 : index
    %1 = vector.load %arg2[%c0_1, %c0_2] : memref<32x128xf32, #tpu.memory_space<vmem>>, vector<32x128xf32>
    %cst = arith.constant dense<0.000000e+00> : vector<128x128xf32>
    %2 = tpu.matmul %0, %1, %cst {dimension_numbers = #tpu.dot_dimension_numbers<[1], [0], [0], [1], [0, 0, 1, 1], [], []>} : vector<128x32xf32>, vector<32x128xf32>, vector<128x128xf32> -> vector<128x128xf32>
    %c0_3 = arith.constant 0 : index
    %c0_4 = arith.constant 0 : index
    %3 = vector.load %arg3[%c0_3, %c0_4] : memref<128x1xf32, #tpu.memory_space<vmem>>, vector<128x1xf32>
    %4 = vector.broadcast %3 : vector<128x1xf32> to vector<128x128xf32>
    %5 = arith.mulf %2, %4 : vector<128x128xf32>
    %c0_5 = arith.constant 0 : index
    %c0_6 = arith.constant 0 : index
    %6 = vector.load %arg4[%c0_5, %c0_6] : memref<128x128xf32, #tpu.memory_space<vmem>>, vector<128x128xf32>
    tpu.vector_store %arg4[%c0_5, %c0_6], %5 {strides = array<i32>} : memref<128x128xf32, #tpu.memory_space<vmem>>, vector<128x128xf32>,
    return
  }
  func.func @transform_0(%arg0: i32) -> (i32, i32) {
    %c0_i32 = arith.constant 0 : i32
    %c0_i32_0 = arith.constant 0 : i32
    return %arg0, %c0_i32 : i32, i32
  }
  func.func @transform_1(%arg0: i32) -> (i32, i32) {
    %c0_i32 = arith.constant 0 : i32
    %c0_i32_0 = arith.constant 0 : i32
    %c0_i32_1 = arith.constant 0 : i32
    return %c0_i32, %c0_i32_0 : i32, i32
  }
  func.func @transform_2(%arg0: i32) -> (i32, i32) {
    %c0_i32 = arith.constant 0 : i32
    %c0_i32_0 = arith.constant 0 : i32
    return %arg0, %c0_i32 : i32, i32
  }
  func.func @transform_3(%arg0: i32) -> (i32, i32) {
    %c0_i32 = arith.constant 0 : i32
    %c0_i32_0 = arith.constant 0 : i32
    return %arg0, %c0_i32 : i32, i32
  }
}

</mosaic_0001>

<bundles_post_ra>
// kernel: tpu_custom_call.1
= control target key start
LH: loop header
LB: loop body
LE: loop exit
PB: predicated region body
PF: predicated region fallthrough
CT: control target
= control target key end

     0   :  { %vm35_vm0 = vcmask 261120   ;;  %v477_v16 = vmov 0   ;;  %s628_s0 = inlined_call_operand.vmem [shape: f32[128,32], index: 0, kind: input, shape index: {}]   ;;  %s629_s1 = inlined_call_operand.vmem [shape: f32[32,128], index: 1, kind: input, shape index: {}]   ;;  %s630_s2 = inlined_call_operand.vmem [shape: f32[128,1], index: 2, kind: input, shape index: {}]   ;;  %s631_s3 = inlined_call_operand.hbm [shape: f32[128,128], index: 3, kind: output, shape index: {}]  }
   0x1   :  { %v34_v0 = vld [vmem:[%s629_s1 + $0x18] sm:$0xff]  ;;  %v33_v1 = vld [vmem:[%s629_s1 + $0x10] sm:$0xff]  ;;  %v32_v2 = vld [vmem:[%s629_s1 + $0x8] sm:$0xff]  ;;  %454 = vset.pattern.permute.xlu1 %v477_v16  ;;  %453 = vset.pattern.permute.xlu0 %v477_v16 }
   0x2   :  { %409 = vmatprep.subr.mxu0 %v34_v0  ;;  %441 = vmatprep.subr.mxu1 %v34_v0  ;;  %v31_v3 = vld [vmem:[%s629_s1] sm:$0xff]  ;;  %v16_v6 = vld [vmem:[%s628_s0 + $0x8] sm:$0xff]  ;;  %v17_v8 = vld [vmem:[%s628_s0 + $0x10] sm:$0xff] }
   0x3   :  { %410 = vmatpush3.msra.mxu0 %v34_v0  ;;  %445 = vmatpush3.msra.mxu1 %v34_v0  ;;  %v15_v4 = vld [vmem:[%s628_s0] sm:$0xff]  ;;  %v24_v7 = vld [vmem:[%s628_s0 + $0x48] sm:$0xff]  ;;  %v25_v9 = vld [vmem:[%s628_s0 + $0x50] sm:$0xff] }
   0x4   :  { %411 = vmatprep.subr.mxu0 %v33_v1  ;;  %442 = vmatprep.subr.mxu1 %v33_v1  ;;  %v23_v5 = vld [vmem:[%s628_s0 + $0x40] sm:$0xff]  ;;  %v231_v10 = vld [vmem:[%s630_s2 + $0x10] sm:$0xff]  ;;  %v18_v12 = vld [vmem:[%s628_s0 + $0x18] sm:$0xff] }
   0x5   :  { %412 = vmatpush3.msra.mxu0 %v33_v1  ;;  %446 = vmatpush3.msra.mxu1 %v33_v1  ;;  %v229_v11 = vld [vmem:[%s630_s2] sm:$0xff]  ;;  %v26_v13 = vld [vmem:[%s628_s0 + $0x58] sm:$0xff] }
   0x6   :  { %413 = vmatprep.subr.mxu0 %v32_v2  ;;  %443 = vmatprep.subr.mxu1 %v32_v2  ;;  %v19_v14 = vld [vmem:[%s628_s0 + $0x20] sm:$0xff] }
   0x7   :  { %414 = vmatpush3.msra.mxu0 %v32_v2  ;;  %447 = vmatpush3.msra.mxu1 %v32_v2  ;;  %v27_v15 = vld [vmem:[%s628_s0 + $0x60] sm:$0xff] }
   0x8   :  { %415 = vmatprep.subr.mxu0 %v31_v3  ;;  %444 = vmatprep.subr.mxu1 %v31_v3 }
   0x9   :  { %416 = vmatpush3.msra.mxu0 %v31_v3  ;;  %448 = vmatpush3.msra.mxu1 %v31_v3 }
   0xa   :  { %417 = vmatprep.mubr.msk.f32.mxu0 %vm35_vm0, %v15_v4  ;;  %429 = vmatprep.mubr.msk.f32.mxu1 %vm35_vm0, %v23_v5 }
   0xb   :  { %418 = vmatmul.mubr.msk.f32.vlgmr.msra.gmra.mxu0 %vm35_vm0, %v16_v6  ;;  %430 = vmatmul.mubr.msk.f32.vlgmr.msra.gmra.mxu1 %vm35_vm0, %v24_v7 }
   0xc   :  { %420 = vmatprep.mubr.msk.f32.mxu0 %vm35_vm0, %v17_v8  ;;  %432 = vmatprep.mubr.msk.f32.mxu1 %vm35_vm0, %v25_v9 }
   0xd   :  { %8 = vsyncpa [#allocation3], 0  ;;  %257 = vperm.xlu1 %454, %v231_v10   ;;  %247 = vperm.xlu0 %453, %v229_v11   ;;  %v232_v17 = vld [vmem:[%s630_s2 + $0x18] sm:$0xff]  ;;  %v230_v18 = vld [vmem:[%s630_s2 + $0x8] sm:$0xff] }
   0xe   :  { %v20_v19 = vld [vmem:[%s628_s0 + $0x28] sm:$0xff]  ;;  %v21_v21 = vld [vmem:[%s628_s0 + $0x30] sm:$0xff]  ;;  %v233_v24 = vld [vmem:[%s630_s2 + $0x20] sm:$0xff] }
   0xf   :  { %421 = vmatmul.mubr.msk.f32.gmra.mxu0 %vm35_vm0, %v18_v12  ;;  %433 = vmatmul.mubr.msk.f32.gmra.mxu1 %vm35_vm0, %v26_v13  ;;  %v28_v20 = vld [vmem:[%s628_s0 + $0x68] sm:$0xff]  ;;  %v29_v22 = vld [vmem:[%s628_s0 + $0x70] sm:$0xff]  ;;  %v22_v25 = vld [vmem:[%s628_s0 + $0x38] sm:$0xff] }
  0x10   :  { %423 = vmatprep.mubr.msk.f32.mxu0 %vm35_vm0, %v19_v14  ;;  %435 = vmatprep.mubr.msk.f32.mxu1 %vm35_vm0, %v27_v15  ;;  %v234_v23 = vld [vmem:[%s630_s2 + $0x28] sm:$0xff]  ;;  %v30_v26 = vld [vmem:[%s628_s0 + $0x78] sm:$0xff]  ;;  %v235_v28 = vld [vmem:[%s630_s2 + $0x30] sm:$0xff] }
  0x11   :  { %262 = vperm.xlu1 %454, %v232_v17   ;;  %252 = vperm.xlu0 %453, %v230_v18   ;;  %v236_v27 = vld [vmem:[%s630_s2 + $0x38] sm:$0xff]  ;;  %v238_v29 = vld [vmem:[%s630_s2 + $0x48] sm:$0xff]  ;;  %v237_v30 = vld [vmem:[%s630_s2 + $0x40] sm:$0xff] }
  0x12   :  { %v240_v31 = vld [vmem:[%s630_s2 + $0x58] sm:$0xff]  ;;  %v239_v32 = vld [vmem:[%s630_s2 + $0x50] sm:$0xff]  ;;  %v242_v33 = vld [vmem:[%s630_s2 + $0x68] sm:$0xff] }
  0x13   :  { %424 = vmatmul.mubr.msk.f32.gmra.mxu0 %vm35_vm0, %v20_v19  ;;  %436 = vmatmul.mubr.msk.f32.gmra.mxu1 %vm35_vm0, %v28_v20  ;;  %v241_v34 = vld [vmem:[%s630_s2 + $0x60] sm:$0xff]  ;;  %v244_v35 = vld [vmem:[%s630_s2 + $0x78] sm:$0xff]  ;;  %v243_v36 = vld [vmem:[%s630_s2 + $0x70] sm:$0xff]  ;;  %s478_s2 = smov [#allocation2]  }
  0x14   :  { %426 = vmatprep.mubr.msk.f32.mxu0 %vm35_vm0, %v21_v21  ;;  %438 = vmatprep.mubr.msk.f32.mxu1 %vm35_vm0, %v29_v22  ;;  %s362_s26 = sshll.u32 %s478_s2, 4  ;;  %s363_s26 = int_to_ptr.vmem [resolvable:$true] %s362_s26 }
  0x15   :  { %272 = vperm.xlu1 %454, %v234_v23   ;;  %267 = vperm.xlu0 %453, %v233_v24   ;;  %s455_s27 = scalar_lea.vmem %s363_s26, 2048  ;;  %p460_p1 = scmp.lt.s32.totalorder %s363_s26, %s363_s26 }
  0x16   :  { %p456_p0 = scmp.ne.s32.totalorder %s363_s26, %s455_s27  ;;  %p461_p2 = scmp.lt.s32.totalorder %s455_s27, %s455_s27 }
  0x17   :  { %427 = vmatmul.mubr.msk.f32.gmra.mxu0 %vm35_vm0, %v22_v25  ;;  %439 = vmatmul.mubr.msk.f32.gmra.mxu1 %vm35_vm0, %v30_v26 }
  0x18   :  { %p462_p3 = por %p461_p2, %p460_p1 }
  0x19   :  { %282 = vperm.xlu1 %454, %v236_v27   ;;  %277 = vperm.xlu0 %453, %v235_v28  }
  0x1a   :  { %p463_p4 = pnand %p462_p3, %p456_p0 }
  0x1d   :  { %292 = vperm.xlu1 %454, %v238_v29   ;;  %287 = vperm.xlu0 %453, %v237_v30  }
  0x21   :  { %302 = vperm.xlu1 %454, %v240_v31   ;;  %297 = vperm.xlu0 %453, %v239_v32  }
  0x25   :  { %312 = vperm.xlu1 %454, %v242_v33   ;;  %307 = vperm.xlu0 %453, %v241_v34  }
  0x29   :  { %322 = vperm.xlu1 %454, %v244_v35   ;;  %317 = vperm.xlu0 %453, %v243_v36  }
  0x88   :  { %v258_v37 = vpop.permute.xlu1 %257  ;;  %v248_v38 = vpop.permute.xlu0 %247 }
  0x8c   :  { %v263_v39 = vpop.permute.xlu1 %262  ;;  %v253_v40 = vpop.permute.xlu0 %252 }
  0x90   :  { %v273_v41 = vpop.permute.xlu1 %272  ;;  %v268_v42 = vpop.permute.xlu0 %267 }
  0x94   :  { %v283_v43 = vpop.permute.xlu1 %282  ;;  %v278_v44 = vpop.permute.xlu0 %277 }
  0x98   :  { %v293_v45 = vpop.permute.xlu1 %292  ;;  %v288_v46 = vpop.permute.xlu0 %287 }
  0x9c   :  { %v303_v47 = vpop.permute.xlu1 %302  ;;  %v298_v50 = vpop.permute.xlu0 %297 }
  0xa0   :  { %v313_v59 = vpop.permute.xlu1 %312  ;;  %v308_v0 = vpop.permute.xlu0 %307 }
  0xa4   :  { %v323_v9 = vpop.permute.xlu1 %322  ;;  %v318_v14 = vpop.permute.xlu0 %317 }
  0xcb   :  { %v419_v48 = vpop.f32.mrf.mxu0  ;;  %v431_v49 = vpop.f32.mrf.mxu1 }
  0xcc   :  { %v326_v51 = vmul.f32 %v419_v48, %v253_v40  ;;  %v334_v52 = vmul.f32 %v431_v49, %v293_v45 }
  0xcd   :  { %v150_v53 = vpop.f32.mrf.mxu0  ;;  %v190_v54 = vpop.f32.mrf.mxu1 }
  0xce   :  { %342 = vst [vmem:[#allocation2 + $0x8] sm:$0xff] %v326_v51  ;;  %350 = vst [vmem:[#allocation2 + $0x48] sm:$0xff] %v334_v52  ;;  %v325_v55 = vmul.f32 %v248_v38, %v150_v53  ;;  %v333_v56 = vmul.f32 %v288_v46, %v190_v54 }
  0xcf   :  { %v422_v57 = vpop.f32.mrf.mxu0  ;;  %v434_v58 = vpop.f32.mrf.mxu1 }
  0xd0   :  { %341 = vst [vmem:[#allocation2] sm:$0xff] %v325_v55  ;;  %349 = vst [vmem:[#allocation2 + $0x40] sm:$0xff] %v333_v56  ;;  %v328_v60 = vmul.f32 %v422_v57, %v263_v39  ;;  %v336_v61 = vmul.f32 %v434_v58, %v303_v47 }
  0xd1   :  { %v160_v62 = vpop.f32.mrf.mxu0  ;;  %v200_v63 = vpop.f32.mrf.mxu1 }
  0xd2   :  { %344 = vst [vmem:[#allocation2 + $0x18] sm:$0xff] %v328_v60  ;;  %352 = vst [vmem:[#allocation2 + $0x58] sm:$0xff] %v336_v61  ;;  %v327_v1 = vmul.f32 %v258_v37, %v160_v62  ;;  %v335_v2 = vmul.f32 %v298_v50, %v200_v63 }
  0xd3   :  { %v425_v3 = vpop.f32.mrf.mxu0  ;;  %v437_v4 = vpop.f32.mrf.mxu1 }
  0xd4   :  { %343 = vst [vmem:[#allocation2 + $0x10] sm:$0xff] %v327_v1  ;;  %351 = vst [vmem:[#allocation2 + $0x50] sm:$0xff] %v335_v2  ;;  %v330_v5 = vmul.f32 %v425_v3, %v273_v41  ;;  %v338_v6 = vmul.f32 %v437_v4, %v313_v59 }
  0xd5   :  { %v170_v7 = vpop.f32.mrf.mxu0  ;;  %v210_v8 = vpop.f32.mrf.mxu1 }
  0xd6   :  { %346 = vst [vmem:[#allocation2 + $0x28] sm:$0xff] %v330_v5  ;;  %354 = vst [vmem:[#allocation2 + $0x68] sm:$0xff] %v338_v6  ;;  %v329_v10 = vmul.f32 %v268_v42, %v170_v7  ;;  %v337_v11 = vmul.f32 %v308_v0, %v210_v8 }
  0xd7   :  { %v428_v12 = vpop.f32.mrf.mxu0  ;;  %v440_v13 = vpop.f32.mrf.mxu1 }
  0xd8   :  { %345 = vst [vmem:[#allocation2 + $0x20] sm:$0xff] %v329_v10  ;;  %353 = vst [vmem:[#allocation2 + $0x60] sm:$0xff] %v337_v11  ;;  %v332_v15 = vmul.f32 %v428_v12, %v283_v43  ;;  %v340_v16 = vmul.f32 %v440_v13, %v323_v9 }
  0xd9   :  { %v180_v17 = vpop.f32.mrf.mxu0  ;;  %v220_v18 = vpop.f32.mrf.mxu1 }
  0xda   :  { %348 = vst [vmem:[#allocation2 + $0x38] sm:$0xff] %v332_v15  ;;  %356 = vst [vmem:[#allocation2 + $0x78] sm:$0xff] %v340_v16  ;;  %v331_v19 = vmul.f32 %v278_v44, %v180_v17  ;;  %v339_v20 = vmul.f32 %v318_v14, %v220_v18 }
  0xdc   :  { %347 = vst [vmem:[#allocation2 + $0x30] sm:$0xff] %v331_v19  ;;  %355 = vst [vmem:[#allocation2 + $0x70] sm:$0xff] %v339_v20 }
  0xdd   :  { %466 = shalt.err (!%p463_p4)
}
  0xde   :  { %s479_s28 = smov 128   ;;  %s480_s29 = smov 8  }
  0xdf   :  { %368 = dma.vmem_to_hbm [thread:$0]  %s363_s26, 2048, %s631_s3, [#allocation3], %s479_s28, %s479_s28, %s480_s29  }
  0xe0   :  { %475 = dma.done.wait [#allocation3], 2048  }
  0xe1   :  { %476 = vsyncadd [#allocation3], 4294965248 }
  0xe2   :  { %372 = vsyncpa [#allocation3], 1 }

</bundles_post_ra>
